<compile_context>
chip_gen: v5e
topology: v5e:2x2
jax: 0.10.0
libtpu: 0.0.40
codegen_flags: <defaults>
</compile_context>

<pallas_src>
import functools

import jax
import jax.numpy as jnp
from jax.experimental import pallas as pl
from jax.experimental.pallas import tpu as pltpu


def _round_up(x, m):
    return (x + m - 1) // m * m


def _vmem_capacity_bytes():
    # Physical VMEM per TensorCore: 128 MiB on v5e/v6e, 64 MiB on v7x.
    try:
        return int(pltpu.get_tpu_info().vmem_capacity_bytes)
    except Exception:
        return 64 * 1024 * 1024  # conservative fallback (v7x)


def _working_set_bytes(tm, K, D, in_itm, out_itm):
    patches = 2 * tm * K * in_itm      # double-buffered input tile
    weight = 2 * K * D * in_itm        # weight block (2 buffers allocated)
    consts = 2 * (2 * D * 4)           # bias + gamma (f32), 2 buffers each
    outb = 2 * tm * D * out_itm        # double-buffered output tile
    f32_tmp = 2 * tm * D * 4           # f32 accumulator + normed temporaries
    scratch = 1 << 20                  # compiler-internal scratch headroom
    return patches + weight + consts + outb + f32_tmp + scratch


def _choose_row_tile(M, K, D, in_itm, out_itm, vmem_budget):
    # Start large (amortizes ~0.35us/grid-step overhead; easily fits v5e/v6e's
    # 128 MiB VMEM), shrink until the double-buffered working set fits budget.
    tm = 1024
    while tm > 8 and _working_set_bytes(tm, K, D, in_itm, out_itm) > vmem_budget:
        tm //= 2
    tm = max(8, min(tm, _round_up(M, 8)))
    num_tiles = pl.cdiv(M, tm)
    if num_tiles == 1 and M > 8:
        num_tiles = 2            # v7x: give both TensorCores a grid step
    elif num_tiles > 1 and num_tiles % 2 == 1:
        num_tiles += 1           # even step count for 2-TC load balance
    # Re-balance so the last tile is not mostly ragged/zero rows.
    tm = _round_up(pl.cdiv(M, num_tiles), 8)
    num_tiles = pl.cdiv(M, tm)
    return tm, num_tiles


def _patch_embed_kernel(p_ref, w_ref, b_ref, g_ref, o_ref, *, eps):
    # p_ref: (tm, K) flattened patches       (native / compute dtype)
    # w_ref: (K, D)  conv weight, (D,K).T    (native / compute dtype)
    # b_ref: (1, D)  conv bias, float32
    # g_ref: (1, D)  RMSNorm weight, float32
    # o_ref: (tm, D) output, activation dtype
    acc = jnp.dot(p_ref[...], w_ref[...], preferred_element_type=jnp.float32)
    acc = acc + b_ref[...]
    # RMSNorm in float32 (matches x.float() in the reference) ...
    ms = jnp.mean(acc * acc, axis=-1, keepdims=True)
    normed = acc * jax.lax.rsqrt(ms + eps)
    # ... cast back to the activation dtype (type_as(x)), then apply gamma.
    normed = normed.astype(o_ref.dtype)
    o_ref[...] = (normed.astype(jnp.float32) * g_ref[...]).astype(o_ref.dtype)


def prepare_aimv2_patch_embed_params(conv_w, conv_b, norm_w, *, param_dtype=None):
    """One-time parameter preprocessing (hoisted out of the forward path).

    conv_w: (D, 3, p, p) -> (K, D) matmul weight (optionally cast, e.g. to
    bfloat16 for the MXU-native path); bias / gamma are pre-cast to float32.
    """
    D, C, kh, kw = conv_w.shape
    K = C * kh * kw
    w2d = conv_w.reshape(D, K).T
    if param_dtype is not None:
        w2d = w2d.astype(param_dtype)
    b2d = conv_b.reshape(1, D).astype(jnp.float32)
    g2d = norm_w.reshape(1, D).astype(jnp.float32)
    return w2d, b2d, g2d


def aimv2_patch_embed(x, w2d, b2d, g2d, *, patch_size, eps=1e-6):
    """x: (B, 3, H, W) NCHW; params from prepare_aimv2_patch_embed_params.

    Returns (B, N_patches, D) in x.dtype.
    """
    B, C, H, W = x.shape
    K, D = w2d.shape
    assert K == C * patch_size * patch_size
    assert H % patch_size == 0 and W % patch_size == 0
    nh, nw = H // patch_size, W // patch_size
    N = nh * nw
    M = B * N

    # Patch extraction: (B,C,H,W) -> (M, K) in the conv-weight (C, kh, kw)
    # flattening order.  Written to HBM exactly once (no pad copies).
    # TODO(synk): assemble tiles in-kernel (pl.ANY + strided make_async_copy)
    # to remove this materialization entirely.
    patches = x.reshape(B, C, nh, patch_size, nw, patch_size)
    patches = patches.transpose(0, 2, 4, 1, 3, 5).reshape(M, K)
    if patches.dtype != w2d.dtype:
        patches = patches.astype(w2d.dtype)  # fuses into the transpose producer

    in_itm = w2d.dtype.itemsize
    out_itm = x.dtype.itemsize

    vmem_cap = _vmem_capacity_bytes()
    tm, num_tiles = _choose_row_tile(M, K, D, in_itm, out_itm, int(vmem_cap * 0.4))
    est = _working_set_bytes(tm, K, D, in_itm, out_itm)
    # Always set the scoped-VMEM limit explicitly (v5e default is only 16 MiB)
    # and keep headroom below the physical capacity (64 MiB on v7x).
    vmem_limit = int(min(max(est * 1.25, 32 << 20), vmem_cap - (8 << 20)))

    kernel = functools.partial(_patch_embed_kernel, eps=eps)

    # Note: D is the full last dim of the output block; a D that is a multiple
    # of 128 keeps stores lane-dense (true for typical configs).
    out = pl.pallas_call(
        kernel,
        out_shape=jax.ShapeDtypeStruct((M, D), x.dtype),
        grid_spec=pltpu.PrefetchScalarGridSpec(
            num_scalar_prefetch=0,
            grid=(num_tiles,),
            in_specs=[
                pl.BlockSpec((tm, K), lambda i: (i, 0)),
                # Grid-invariant blocks (weight / bias / gamma); fetched once,
                # double-buffer allocation accounted for in the estimate above.
                pl.BlockSpec((K, D), lambda i: (0, 0)),
                pl.BlockSpec((1, D), lambda i: (0, 0)),
                pl.BlockSpec((1, D), lambda i: (0, 0)),
            ],
            out_specs=pl.BlockSpec((tm, D), lambda i: (i, 0)),
        ),
        compiler_params=pltpu.CompilerParams(
            dimension_semantics=("parallel",),
            vmem_limit_bytes=vmem_limit,
        ),
    )(patches, w2d, b2d, g2d)

    return out.reshape(B, N, D)


def _reference(x, conv_w, conv_b, norm_w, *, patch_size, eps=1e-6):
    # Pure-JAX reference mirroring the PyTorch module semantics.
    B, C, H, W = x.shape
    D = conv_w.shape[0]
    nh, nw = H // patch_size, W // patch_size
    p = x.reshape(B, C, nh, patch_size, nw, patch_size)
    p = p.transpose(0, 2, 4, 1, 3, 5).reshape(B, nh * nw, -1)
    y = jnp.einsum("bnk,dk->bnd", p, conv_w.reshape(D, -1)) + conv_b
    yf = y.astype(jnp.float32)
    normed = yf * jax.lax.rsqrt(jnp.mean(yf * yf, axis=-1, keepdims=True) + eps)
    normed = normed.astype(y.dtype)  # type_as(x)
    return (normed.astype(jnp.float32) * norm_w.astype(jnp.float32)).astype(y.dtype)


if __name__ == "__main__":
    # Small config consistent with the module: Conv2d(3, ...) fixes C=3,
    # patch_size=8, intermediate size D=128.
    B, C, H, W = 2, 3, 16, 16
    patch_size = 8
    D = 128
    eps = 1e-6

    key = jax.random.PRNGKey(0)
    kx, kw, kb, kg = jax.random.split(key, 4)

    x = jax.random.normal(kx, (B, C, H, W), dtype=jnp.float32)
    conv_w = jax.random.normal(kw, (D, C, patch_size, patch_size), dtype=jnp.float32) * 0.02
    conv_b = jax.random.normal(kb, (D,), dtype=jnp.float32) * 0.01
    norm_w = 1.0 + 0.1 * jax.random.normal(kg, (D,), dtype=jnp.float32)

    # One-time parameter prep (hoisted out of the per-call path).  For the
    # bf16 MXU-native path pass param_dtype=jnp.bfloat16 here (numerics flag).
    w2d, b2d, g2d = prepare_aimv2_patch_embed_params(
        conv_w, conv_b, norm_w, param_dtype=x.dtype)

    fn = jax.jit(functools.partial(aimv2_patch_embed, patch_size=patch_size, eps=eps))
    out = jax.block_until_ready(fn(x, w2d, b2d, g2d))

    ref = _reference(x, conv_w, conv_b, norm_w, patch_size=patch_size, eps=eps)
    assert out.shape == (B, (H // patch_size) * (W // patch_size), D)
    assert jnp.allclose(out, ref, atol=1e-4, rtol=1e-4), "mismatch vs reference"

    print("KERNEL_OK")
</pallas_src>

<mosaic_0001>
module attributes {stable_mosaic.version = 11 : i64} {
  func.func @_patch_embed_kernel(%arg0: i32, %arg1: memref<8x192xf32, #tpu.memory_space<vmem>>, %arg2: memref<192x128xf32, #tpu.memory_space<vmem>>, %arg3: memref<1x128xf32, #tpu.memory_space<vmem>>, %arg4: memref<1x128xf32, #tpu.memory_space<vmem>>, %arg5: memref<8x128xf32, #tpu.memory_space<vmem>>) attributes {dimension_semantics = [#tpu.dimension_semantics<parallel>], iteration_bounds = array<i64: 1>, scalar_prefetch = 0 : i64, scratch_operands = 0 : i64, tpu.core_type = #tpu.core_type<tc>, window_params = [{transform_indices = @transform_0, window_bounds = array<i64: 8, 192>}, {pipeline_mode = #tpu.pipeline_mode<synchronous>, transform_indices = @transform_1, window_bounds = array<i64: 192, 128>}, {pipeline_mode = #tpu.pipeline_mode<synchronous>, transform_indices = @transform_2, window_bounds = array<i64: 1, 128>}, {pipeline_mode = #tpu.pipeline_mode<synchronous>, transform_indices = @transform_3, window_bounds = array<i64: 1, 128>}, {transform_indices = @transform_4, window_bounds = array<i64: 8, 128>}]} {
    %c0 = arith.constant 0 : index
    %c0_0 = arith.constant 0 : index
    %0 = vector.load %arg1[%c0, %c0_0] : memref<8x192xf32, #tpu.memory_space<vmem>>, vector<8x192xf32>
    %c0_1 = arith.constant 0 : index
    %c0_2 = arith.constant 0 : index
    %1 = vector.load %arg2[%c0_1, %c0_2] : memref<192x128xf32, #tpu.memory_space<vmem>>, vector<192x128xf32>
    %cst = arith.constant dense<0.000000e+00> : vector<8x128xf32>
    %2 = tpu.matmul %0, %1, %cst {dimension_numbers = #tpu.dot_dimension_numbers<[1], [0], [0], [1], [0, 0, 1, 1], [], []>} : vector<8x192xf32>, vector<192x128xf32>, vector<8x128xf32> -> vector<8x128xf32>
    %c0_3 = arith.constant 0 : index
    %c0_4 = arith.constant 0 : index
    %3 = vector.load %arg3[%c0_3, %c0_4] : memref<1x128xf32, #tpu.memory_space<vmem>>, vector<1x128xf32>
    %4 = vector.broadcast %3 : vector<1x128xf32> to vector<8x128xf32>
    %5 = arith.addf %2, %4 : vector<8x128xf32>
    %6 = arith.mulf %5, %5 : vector<8x128xf32>
    %cst_5 = arith.constant dense<0.000000e+00> : vector<8xf32>
    %7 = vector.multi_reduction <add>, %6, %cst_5 [1] : vector<8x128xf32> to vector<8xf32>
    %8 = vector.shape_cast %7 : vector<8xf32> to vector<8x1xf32>
    %cst_6 = arith.constant 1.280000e+02 : f32
    %9 = vector.broadcast %cst_6 : f32 to vector<8x1xf32>
    %10 = arith.divf %8, %9 : vector<8x1xf32>
    %cst_7 = arith.constant 9.99999997E-7 : f32
    %11 = vector.broadcast %cst_7 : f32 to vector<8x1xf32>
    %12 = arith.addf %10, %11 : vector<8x1xf32>
    %13 = math.rsqrt %12 : vector<8x1xf32>
    %14 = vector.broadcast %13 : vector<8x1xf32> to vector<8x128xf32>
    %15 = arith.mulf %5, %14 : vector<8x128xf32>
    %c0_8 = arith.constant 0 : index
    %c0_9 = arith.constant 0 : index
    %16 = vector.load %arg4[%c0_8, %c0_9] : memref<1x128xf32, #tpu.memory_space<vmem>>, vector<1x128xf32>
    %17 = vector.broadcast %16 : vector<1x128xf32> to vector<8x128xf32>
    %18 = arith.mulf %15, %17 : vector<8x128xf32>
    %c0_10 = arith.constant 0 : index
    %c0_11 = arith.constant 0 : index
    %19 = vector.load %arg5[%c0_10, %c0_11] : memref<8x128xf32, #tpu.memory_space<vmem>>, vector<8x128xf32>
    tpu.vector_store %arg5[%c0_10, %c0_11], %18 {strides = array<i32>} : memref<8x128xf32, #tpu.memory_space<vmem>>, vector<8x128xf32>,
    return
  }
  func.func @transform_0(%arg0: i32) -> (i32, i32) {
    %c0_i32 = arith.constant 0 : i32
    %c0_i32_0 = arith.constant 0 : i32
    return %arg0, %c0_i32 : i32, i32
  }
  func.func @transform_1(%arg0: i32) -> (i32, i32) {
    %c0_i32 = arith.constant 0 : i32
    %c0_i32_0 = arith.constant 0 : i32
    %c0_i32_1 = arith.constant 0 : i32
    return %c0_i32, %c0_i32_0 : i32, i32
  }
  func.func @transform_2(%arg0: i32) -> (i32, i32) {
    %c0_i32 = arith.constant 0 : i32
    %c0_i32_0 = arith.constant 0 : i32
    %c0_i32_1 = arith.constant 0 : i32
    return %c0_i32, %c0_i32_0 : i32, i32
  }
  func.func @transform_3(%arg0: i32) -> (i32, i32) {
    %c0_i32 = arith.constant 0 : i32
    %c0_i32_0 = arith.constant 0 : i32
    %c0_i32_1 = arith.constant 0 : i32
    return %c0_i32, %c0_i32_0 : i32, i32
  }
  func.func @transform_4(%arg0: i32) -> (i32, i32) {
    %c0_i32 = arith.constant 0 : i32
    %c0_i32_0 = arith.constant 0 : i32
    return %arg0, %c0_i32 : i32, i32
  }
}

</mosaic_0001>

<bundles_post_ra>
// kernel: aimv2_patch_embed.1
= control target key start
LH: loop header
LB: loop body
LE: loop exit
PB: predicated region body
PF: predicated region fallthrough
CT: control target
= control target key end

     0   :  { %s286_s0 = inlined_call_operand.vmem [shape: f32[8,192], index: 0, kind: input, shape index: {}]   ;;  %s287_s1 = inlined_call_operand.vmem [shape: f32[192,128], index: 1, kind: input, shape index: {}]   ;;  %s288_s2 = inlined_call_operand.vmem [shape: f32[1,128], index: 2, kind: input, shape index: {}]   ;;  %s289_s3 = inlined_call_operand.vmem [shape: f32[1,128], index: 3, kind: input, shape index: {}]   ;;  %s290_s4 = inlined_call_operand.hbm [shape: f32[8,128], index: 4, kind: output, shape index: {}]  }
   0x1   :  { %v35_v0 = vld [vmem:[%s287_s1 + $0x78] sm:$0xff]  ;;  %v34_v1 = vld [vmem:[%s287_s1 + $0x70] sm:$0xff]  ;;  %v33_v2 = vld [vmem:[%s287_s1 + $0x68] sm:$0xff] }
   0x2   :  { %52 = vmatpush.msra.mxu0 %v35_v0  ;;  %v43_v3 = vld [vmem:[%s287_s1 + $0xb8] sm:$0xff]  ;;  %v32_v4 = vld [vmem:[%s287_s1 + $0x60] sm:$0xff]  ;;  %v42_v5 = vld [vmem:[%s287_s1 + $0xb0] sm:$0xff] }
   0x3   :  { %80 = vmatpush.msra.mxu1 %v43_v3  ;;  %v41_v6 = vld [vmem:[%s287_s1 + $0xa8] sm:$0xff]  ;;  %v31_v7 = vld [vmem:[%s287_s1 + $0x58] sm:$0xff]  ;;  %v40_v8 = vld [vmem:[%s287_s1 + $0xa0] sm:$0xff] }
   0x4   :  { %53 = vmatpush.msra.mxu0 %v34_v1  ;;  %v30_v9 = vld [vmem:[%s287_s1 + $0x50] sm:$0xff]  ;;  %v39_v10 = vld [vmem:[%s287_s1 + $0x98] sm:$0xff] }
   0x5   :  { %81 = vmatpush.msra.mxu1 %v42_v5 }
   0x6   :  { %54 = vmatpush.msra.mxu0 %v33_v2 }
   0x7   :  { %82 = vmatpush.msra.mxu1 %v41_v6 }
   0x8   :  { %55 = vmatpush.msra.mxu0 %v32_v4 }
   0xa   :  { %56 = vmatpush.msra.mxu0 %v31_v7 }
   0xb   :  { %9 = vsyncpa [#allocation3], 0  ;;  %v29_v11 = vld [vmem:[%s287_s1 + $0x48] sm:$0xff]  ;;  %83 = vmatpush.msra.mxu1 %v40_v8  ;;  %v38_v12 = vld [vmem:[%s287_s1 + $0x90] sm:$0xff]  ;;  %vm48_vm0 = vcmask 523264   ;;  %v172_v32 = vmov 128.0  }
   0xc   :  { %57 = vmatpush.msra.mxu0 %v30_v9  ;;  %v28_v13 = vld [vmem:[%s287_s1 + $0x40] sm:$0xff]  ;;  %v37_v14 = vld [vmem:[%s287_s1 + $0x88] sm:$0xff]  ;;  %v27_v15 = vld [vmem:[%s287_s1 + $0x38] sm:$0xff]  ;;  %142 = vrcp.f32 %v172_v32  ;;  %s128_s20 = sshll.u32 %s290_s4, 4  ;;  %s129_s20 = int_to_ptr.hbm [resolvable:$true] %s128_s20 }
   0xd   :  { %84 = vmatpush.msra.mxu1 %v39_v10  ;;  %v36_v16 = vld [vmem:[%s287_s1 + $0x80] sm:$0xff]  ;;  %v26_v17 = vld [vmem:[%s287_s1 + $0x30] sm:$0xff]  ;;  %v19_v18 = vld [vmem:[%s286_s0 + $0x8] sm:$0xff] }
   0xe   :  { %58 = vmatpush.msra.mxu0 %v29_v11  ;;  %v25_v19 = vld [vmem:[%s287_s1 + $0x28] sm:$0xff]  ;;  %v24_v20 = vld [vmem:[%s287_s1 + $0x20] sm:$0xff]  ;;  %v23_v21 = vld [vmem:[%s287_s1 + $0x18] sm:$0xff] }
   0xf   :  { %85 = vmatpush.msra.mxu1 %v38_v12  ;;  %v22_v22 = vld [vmem:[%s287_s1 + $0x10] sm:$0xff]  ;;  %v21_v23 = vld [vmem:[%s287_s1 + $0x8] sm:$0xff]  ;;  %v20_v24 = vld [vmem:[%s287_s1] sm:$0xff] }
  0x10   :  { %59 = vmatpush.msra.mxu0 %v28_v13  ;;  %v18_v25 = vld [vmem:[%s286_s0] sm:$0xff] }
  0x11   :  { %86 = vmatpush.msra.mxu1 %v37_v14  ;;  %v140_v26 = vld [vmem:[%s288_s2] ss:$0 sm:$0xff]  ;;  %s173_s2 = smov [#allocation2]  }
  0x12   :  { %60 = vmatpush.msra.mxu0 %v27_v15  ;;  %v143_v33 = vpop.eup %142  ;;  %v141_v48 = vld [vmem:[%s289_s3] ss:$0 sm:$0xff]  ;;  %s126_s17 = sshll.u32 %s173_s2, 4  ;;  %s127_s17 = int_to_ptr.vmem [resolvable:$true] %s126_s17 }
  0x13   :  { %87 = vmatpush.msra.mxu1 %v36_v16  ;;  %v96_v34 = vmul.f32 128.0, %v143_v33  ;;  %vm100_vm1 = vweird.f32 %v143_v33 }
  0x14   :  { %61 = vmatpush.msra.mxu0 %v26_v17  ;;  %137 = vmatmul.msk.f32.vlgmr.msra.gmra.mxu1 %vm48_vm0, %v19_v18 }
  0x15   :  { %v97_v35 = vsub.f32 1.0, %v96_v34 }
  0x16   :  { %62 = vmatpush.msra.mxu0 %v25_v19 }
  0x17   :  { %v98_v36 = vmul.f32 %v143_v33, %v97_v35 }
  0x18   :  { %63 = vmatpush.msra.mxu0 %v24_v20 }
  0x19   :  { %v99_v37 = vadd.f32 %v143_v33, %v98_v36 }
  0x1a   :  { %64 = vmatpush.msra.mxu0 %v23_v21 }
  0x1b   :  { %v101_v38 = vsel %vm100_vm1, %v143_v33, %v99_v37 }
  0x1c   :  { %65 = vmatpush.msra.mxu0 %v22_v22 }
  0x1e   :  { %66 = vmatpush.msra.mxu0 %v21_v23 }
  0x20   :  { %67 = vmatpush.msra.mxu0 %v20_v24 }
  0x21   :  { %68 = vmatmul.f32.vlgmr.msra.gmra.mxu0 %v18_v25 }
  0x91   :  { %v89_v28 = vpop.f32.mrf.mxu1 }
  0x9e   :  { %v69_v27 = vpop.f32.mrf.mxu0 }
  0x9f   :  { %v70_v29 = vadd.f32 %v140_v26, %v69_v27 }
  0xa1   :  { %v90_v30 = vadd.f32 %v89_v28, %v70_v29 }
  0xa3   :  { %v92_v31 = vmul.f32 %v90_v30, %v90_v30 }
  0xa5   :  { %93 = vadd.xlane.f32.xlu0 %v92_v31 }
 0x118   :  { %v94_v39 = vpop.xlane.xlu0 %93 }
 0x119   :  { %v102_v40 = vmul.f32 %v101_v38, %v94_v39 }
 0x11b   :  { %v103_v41 = vadd.f32 1e-06, %v102_v40 }
 0x11d   :  { %144 = vrsqrt.f32 %v103_v41  ;;  %vm110_vm3 = vweird.f32 %v103_v41 }
 0x123   :  { %v145_v42 = vpop.eup %144 }
 0x124   :  { %v105_v43 = vmul.f32 %v145_v42, %v103_v41  ;;  %vm111_vm2 = vweird.f32 %v145_v42 }
 0x125   :  { %vm112_vm4 = vmor %vm110_vm3, %vm111_vm2 }
 0x126   :  { %v106_v44 = vmul.f32 %v145_v42, %v105_v43 }
 0x128   :  { %v107_v45 = vmul.f32 0.5, %v106_v44 }
 0x12a   :  { %v108_v46 = vsub.f32 1.5, %v107_v45 }
 0x12c   :  { %v109_v47 = vmul.f32 %v145_v42, %v108_v46 }
 0x12e   :  { %v113_v49 = vsel %vm112_vm4, %v145_v42, %v109_v47 }
 0x12f   :  { %v114_v50 = vmul.f32 %v113_v49, %v90_v30 }
 0x131   :  { %v119_v51 = vmul.f32 %v141_v48, %v114_v50 }
 0x133   :  { %120 = vst [vmem:[#allocation2] sm:$0xff] %v119_v51 }
 0x134   :  { %131 = dma.vmem_to_hbm [thread:$0]  %s127_s17, 128, %s129_s20, [#allocation3]  }
 0x135   :  { %170 = dma.done.wait [#allocation3], 128  }
 0x136   :  { %171 = vsyncadd [#allocation3], 4294967168 }
 0x137   :  { %136 = vsyncpa [#allocation3], 1 }

</bundles_post_ra>
